<compile_context>
chip_gen: v6e
topology: v6e:2x2x1
jax: 0.10.0
libtpu: 0.0.40
codegen_flags: <defaults>
</compile_context>

<pallas_src>
import functools

import jax
import jax.numpy as jnp
from jax.experimental import pallas as pl
from jax.experimental.pallas import tpu as pltpu


def _min_sublanes(dtype) -> int:
    """Minimum sublane multiple for tile-aligned output blocks of this dtype."""
    return {4: 8, 2: 16, 1: 32}.get(jnp.dtype(dtype).itemsize, 8)


def _resident_gather_kernel(idx_ref, table_ref, out_ref, *, rows):
    # idx_ref:   (N_pad,) int32 in SMEM (scalar prefetch).
    # table_ref: (V, 1, D) table, resident in VMEM for the entire grid.
    # out_ref:   (rows, D) output tile.
    base = pl.program_id(0) * rows
    for r in range(rows):
        # Dynamic leading-dim load -> (1, D) row, stored at sublane r of the
        # output tile.  Per-row stores are full-lane (D wide); the sublane
        # mask costs one store-slot each, which is negligible vs. the
        # per-step overhead and avoids an unaligned sublane concatenate.
        out_ref[pl.ds(r, 1), :] = table_ref[idx_ref[base + r]]


def _hbm_gather_kernel(idx_ref, table_hbm, out_ref, row_buf, sems, *, rows):
    # idx_ref:   (N_pad,) int32 in SMEM (scalar prefetch).
    # table_hbm: (V, 1, D) table left in HBM (memory_space=pl.ANY).
    # out_ref:   (rows, D) auto-pipelined output tile.
    # row_buf:   (rows, D) VMEM staging tile.
    # sems:      (rows,) DMA semaphores, one per in-flight row copy.
    base = pl.program_id(0) * rows
    copies = []
    for r in range(rows):
        cp = pltpu.make_async_copy(
            table_hbm.at[idx_ref[base + r]],      # (1, D) HBM row (gather)
            row_buf.at[pl.ds(r, 1), :],           # (1, D) VMEM slot
            sems.at[r],
        )
        cp.start()
        copies.append(cp)
    for cp in copies:                              # all rows in flight, then drain
        cp.wait()
    # Single unmasked, lane-dense (rows, D) store into the output block.
    out_ref[...] = row_buf[...]


def user_encoder_forward(
    index_tensor,
    emb_table,
    *,
    rows_per_step: int = 64,
    table_vmem_budget_bytes: int = 8 * 1024 * 1024,
):
    """Equivalent of UserEncoder.forward: emb_table[index_tensor]."""
    B, S = index_tensor.shape
    V, D = emb_table.shape
    dtype = emb_table.dtype
    N = B * S

    if N == 0:  # zero-size grid pallas_call is not well defined; guard.
        return jnp.zeros((B, S, D), dtype)

    # Rows per grid step: multiple of the dtype's min sublane tile, shrunk so
    # tiny problems (like the demo) run in a single grid step.
    sub = _min_sublanes(dtype)
    R = max(sub, (int(rows_per_step) // sub) * sub)
    n_pad_min = -(-N // sub) * sub
    R = min(R, n_pad_min)
    n_steps = -(-N // R)
    N_pad = n_steps * R

    idx_flat = index_tensor.reshape(N).astype(jnp.int32)
    # NOTE: torch.nn.Embedding raises on out-of-range indices; we clamp.
    idx_flat = jnp.clip(idx_flat, 0, V - 1)
    if N_pad != N:
        idx_flat = jnp.concatenate(
            [idx_flat, jnp.zeros((N_pad - N,), jnp.int32)]
        )

    # (V, 1, D) view: row gather becomes dynamic indexing of an *untiled*
    # leading dim (both for in-VMEM loads and for HBM DMA sources).
    table3 = emb_table.reshape(V, 1, D)

    out_spec = pl.BlockSpec((R, D), lambda i, idx_ref: (i, 0))
    out_shape = jax.ShapeDtypeStruct((N_pad, D), dtype)
    table_bytes = V * D * jnp.dtype(dtype).itemsize

    if table_bytes <= table_vmem_budget_bytes:
        # ---- Resident-table fast path: whole table lives in VMEM. --------
        # Budget is conservative (accounts for Pallas double-buffering the
        # constant-index table block); safe on v5e/v6e and v7x's 64 MiB VMEM.
        out_flat = pl.pallas_call(
            functools.partial(_resident_gather_kernel, rows=R),
            out_shape=out_shape,
            grid_spec=pltpu.PrefetchScalarGridSpec(
                num_scalar_prefetch=1,                   # idx -> SMEM
                grid=(n_steps,),
                in_specs=[
                    # Constant index_map: fetched once, stays resident.
                    pl.BlockSpec((V, 1, D), lambda i, idx_ref: (0, 0, 0)),
                ],
                out_specs=out_spec,
            ),
            compiler_params=pltpu.CompilerParams(
                dimension_semantics=("parallel",),
                vmem_limit_bytes=48 * 1024 * 1024,
            ),
        )(idx_flat, table3)
    else:
        # ---- Large-vocab path: manual per-row DMA gather from HBM. -------
        out_flat = pl.pallas_call(
            functools.partial(_hbm_gather_kernel, rows=R),
            out_shape=out_shape,
            grid_spec=pltpu.PrefetchScalarGridSpec(
                num_scalar_prefetch=1,                   # idx -> SMEM
                grid=(n_steps,),
                in_specs=[pl.BlockSpec(memory_space=pl.ANY)],   # raw HBM table
                out_specs=out_spec,
                scratch_shapes=[
                    pltpu.VMEM((R, D), dtype),           # staging tile
                    pltpu.SemaphoreType.DMA((R,)),       # one sem per row DMA
                ],
            ),
            compiler_params=pltpu.CompilerParams(
                dimension_semantics=("parallel",),
            ),
        )(idx_flat, table3)

    return out_flat[:N].reshape(B, S, D)


if __name__ == "__main__":
    # Module config (synthetic, deterministic init — nn.Embedding ~ N(0,1)).
    input_dim = 64     # vocabulary size V
    output_dim = 128   # embedding dim D
    batch, seq = 2, 8

    key = jax.random.PRNGKey(0)
    k_idx, k_emb = jax.random.split(key)

    index_tensor = jax.random.randint(
        k_idx, (batch, seq), minval=0, maxval=input_dim, dtype=jnp.int32
    )
    emb_table = jax.random.normal(
        k_emb, (input_dim, output_dim), dtype=jnp.float32
    )

    ref = jnp.take(emb_table, index_tensor, axis=0)

    # Path 1: resident-table fast path (demo table = 32 KiB -> resident).
    out_fast = jax.block_until_ready(user_encoder_forward(index_tensor, emb_table))
    assert out_fast.shape == (batch, seq, output_dim)
    assert jnp.allclose(out_fast, ref, atol=1e-6), "resident path mismatch"

    # Path 2: large-vocab manual-DMA path (forced by zeroing the VMEM budget),
    # so both code paths are compiled and verified on-device.
    out_dma = jax.block_until_ready(
        user_encoder_forward(index_tensor, emb_table, table_vmem_budget_bytes=0)
    )
    assert jnp.allclose(out_dma, ref, atol=1e-6), "HBM DMA path mismatch"

    print("KERNEL_OK")
</pallas_src>

<mosaic_0001>
module attributes {stable_mosaic.version = 11 : i64} {
  func.func @_resident_gather_kernel(%arg0: i32, %arg1: memref<16xi32, #tpu.memory_space<smem>>, %arg2: memref<64x1x128xf32, #tpu.memory_space<vmem>>, %arg3: memref<16x128xf32, #tpu.memory_space<vmem>>) attributes {dimension_semantics = [#tpu.dimension_semantics<parallel>], iteration_bounds = array<i64: 1>, scalar_prefetch = 1 : i64, scratch_operands = 0 : i64, tpu.core_type = #tpu.core_type<tc>, window_params = [{pipeline_mode = #tpu.pipeline_mode<synchronous>, transform_indices = @transform_0, window_bounds = array<i64: 64, 1, 128>}, {transform_indices = @transform_1, window_bounds = array<i64: 16, 128>}]} {
    %c16_i32 = arith.constant 16 : i32
    %0 = arith.muli %arg0, %c16_i32 : i32
    %c0_i32 = arith.constant 0 : i32
    %1 = arith.addi %0, %c0_i32 : i32
    %2 = arith.index_cast %1 : i32 to index
    %3 = memref.load %arg1[%2] : memref<16xi32, #tpu.memory_space<smem>>
    %4 = arith.index_cast %3 : i32 to index
    %c0 = arith.constant 0 : index
    %c0_0 = arith.constant 0 : index
    %5 = vector.load %arg2[%4, %c0, %c0_0] : memref<64x1x128xf32, #tpu.memory_space<vmem>>, vector<1x1x128xf32>
    %6 = vector.shape_cast %5 : vector<1x1x128xf32> to vector<1x128xf32>
    %c0_1 = arith.constant 0 : index
    %c0_2 = arith.constant 0 : index
    %7 = vector.load %arg3[%c0_1, %c0_2] : memref<16x128xf32, #tpu.memory_space<vmem>>, vector<1x128xf32>
    tpu.vector_store %arg3[%c0_1, %c0_2], %6 {strides = array<i32>} : memref<16x128xf32, #tpu.memory_space<vmem>>, vector<1x128xf32>,
    %c1_i32 = arith.constant 1 : i32
    %8 = arith.addi %0, %c1_i32 : i32
    %9 = arith.index_cast %8 : i32 to index
    %10 = memref.load %arg1[%9] : memref<16xi32, #tpu.memory_space<smem>>
    %11 = arith.index_cast %10 : i32 to index
    %c0_3 = arith.constant 0 : index
    %c0_4 = arith.constant 0 : index
    %12 = vector.load %arg2[%11, %c0_3, %c0_4] : memref<64x1x128xf32, #tpu.memory_space<vmem>>, vector<1x1x128xf32>
    %13 = vector.shape_cast %12 : vector<1x1x128xf32> to vector<1x128xf32>
    %c1 = arith.constant 1 : index
    %c0_5 = arith.constant 0 : index
    %14 = vector.load %arg3[%c1, %c0_5] : memref<16x128xf32, #tpu.memory_space<vmem>>, vector<1x128xf32>
    tpu.vector_store %arg3[%c1, %c0_5], %13 {strides = array<i32>} : memref<16x128xf32, #tpu.memory_space<vmem>>, vector<1x128xf32>,
    %c2_i32 = arith.constant 2 : i32
    %15 = arith.addi %0, %c2_i32 : i32
    %16 = arith.index_cast %15 : i32 to index
    %17 = memref.load %arg1[%16] : memref<16xi32, #tpu.memory_space<smem>>
    %18 = arith.index_cast %17 : i32 to index
    %c0_6 = arith.constant 0 : index
    %c0_7 = arith.constant 0 : index
    %19 = vector.load %arg2[%18, %c0_6, %c0_7] : memref<64x1x128xf32, #tpu.memory_space<vmem>>, vector<1x1x128xf32>
    %20 = vector.shape_cast %19 : vector<1x1x128xf32> to vector<1x128xf32>
    %c2 = arith.constant 2 : index
    %c0_8 = arith.constant 0 : index
    %21 = vector.load %arg3[%c2, %c0_8] : memref<16x128xf32, #tpu.memory_space<vmem>>, vector<1x128xf32>
    tpu.vector_store %arg3[%c2, %c0_8], %20 {strides = array<i32>} : memref<16x128xf32, #tpu.memory_space<vmem>>, vector<1x128xf32>,
    %c3_i32 = arith.constant 3 : i32
    %22 = arith.addi %0, %c3_i32 : i32
    %23 = arith.index_cast %22 : i32 to index
    %24 = memref.load %arg1[%23] : memref<16xi32, #tpu.memory_space<smem>>
    %25 = arith.index_cast %24 : i32 to index
    %c0_9 = arith.constant 0 : index
    %c0_10 = arith.constant 0 : index
    %26 = vector.load %arg2[%25, %c0_9, %c0_10] : memref<64x1x128xf32, #tpu.memory_space<vmem>>, vector<1x1x128xf32>
    %27 = vector.shape_cast %26 : vector<1x1x128xf32> to vector<1x128xf32>
    %c3 = arith.constant 3 : index
    %c0_11 = arith.constant 0 : index
    %28 = vector.load %arg3[%c3, %c0_11] : memref<16x128xf32, #tpu.memory_space<vmem>>, vector<1x128xf32>
    tpu.vector_store %arg3[%c3, %c0_11], %27 {strides = array<i32>} : memref<16x128xf32, #tpu.memory_space<vmem>>, vector<1x128xf32>,
    %c4_i32 = arith.constant 4 : i32
    %29 = arith.addi %0, %c4_i32 : i32
    %30 = arith.index_cast %29 : i32 to index
    %31 = memref.load %arg1[%30] : memref<16xi32, #tpu.memory_space<smem>>
    %32 = arith.index_cast %31 : i32 to index
    %c0_12 = arith.constant 0 : index
    %c0_13 = arith.constant 0 : index
    %33 = vector.load %arg2[%32, %c0_12, %c0_13] : memref<64x1x128xf32, #tpu.memory_space<vmem>>, vector<1x1x128xf32>
    %34 = vector.shape_cast %33 : vector<1x1x128xf32> to vector<1x128xf32>
    %c4 = arith.constant 4 : index
    %c0_14 = arith.constant 0 : index
    %35 = vector.load %arg3[%c4, %c0_14] : memref<16x128xf32, #tpu.memory_space<vmem>>, vector<1x128xf32>
    tpu.vector_store %arg3[%c4, %c0_14], %34 {strides = array<i32>} : memref<16x128xf32, #tpu.memory_space<vmem>>, vector<1x128xf32>,
    %c5_i32 = arith.constant 5 : i32
    %36 = arith.addi %0, %c5_i32 : i32
    %37 = arith.index_cast %36 : i32 to index
    %38 = memref.load %arg1[%37] : memref<16xi32, #tpu.memory_space<smem>>
    %39 = arith.index_cast %38 : i32 to index
    %c0_15 = arith.constant 0 : index
    %c0_16 = arith.constant 0 : index
    %40 = vector.load %arg2[%39, %c0_15, %c0_16] : memref<64x1x128xf32, #tpu.memory_space<vmem>>, vector<1x1x128xf32>
    %41 = vector.shape_cast %40 : vector<1x1x128xf32> to vector<1x128xf32>
    %c5 = arith.constant 5 : index
    %c0_17 = arith.constant 0 : index
    %42 = vector.load %arg3[%c5, %c0_17] : memref<16x128xf32, #tpu.memory_space<vmem>>, vector<1x128xf32>
    tpu.vector_store %arg3[%c5, %c0_17], %41 {strides = array<i32>} : memref<16x128xf32, #tpu.memory_space<vmem>>, vector<1x128xf32>,
    %c6_i32 = arith.constant 6 : i32
    %43 = arith.addi %0, %c6_i32 : i32
    %44 = arith.index_cast %43 : i32 to index
    %45 = memref.load %arg1[%44] : memref<16xi32, #tpu.memory_space<smem>>
    %46 = arith.index_cast %45 : i32 to index
    %c0_18 = arith.constant 0 : index
    %c0_19 = arith.constant 0 : index
    %47 = vector.load %arg2[%46, %c0_18, %c0_19] : memref<64x1x128xf32, #tpu.memory_space<vmem>>, vector<1x1x128xf32>
    %48 = vector.shape_cast %47 : vector<1x1x128xf32> to vector<1x128xf32>
    %c6 = arith.constant 6 : index
    %c0_20 = arith.constant 0 : index
    %49 = vector.load %arg3[%c6, %c0_20] : memref<16x128xf32, #tpu.memory_space<vmem>>, vector<1x128xf32>
    tpu.vector_store %arg3[%c6, %c0_20], %48 {strides = array<i32>} : memref<16x128xf32, #tpu.memory_space<vmem>>, vector<1x128xf32>,
    %c7_i32 = arith.constant 7 : i32
    %50 = arith.addi %0, %c7_i32 : i32
    %51 = arith.index_cast %50 : i32 to index
    %52 = memref.load %arg1[%51] : memref<16xi32, #tpu.memory_space<smem>>
    %53 = arith.index_cast %52 : i32 to index
    %c0_21 = arith.constant 0 : index
    %c0_22 = arith.constant 0 : index
    %54 = vector.load %arg2[%53, %c0_21, %c0_22] : memref<64x1x128xf32, #tpu.memory_space<vmem>>, vector<1x1x128xf32>
    %55 = vector.shape_cast %54 : vector<1x1x128xf32> to vector<1x128xf32>
    %c7 = arith.constant 7 : index
    %c0_23 = arith.constant 0 : index
    %56 = vector.load %arg3[%c7, %c0_23] : memref<16x128xf32, #tpu.memory_space<vmem>>, vector<1x128xf32>
    tpu.vector_store %arg3[%c7, %c0_23], %55 {strides = array<i32>} : memref<16x128xf32, #tpu.memory_space<vmem>>, vector<1x128xf32>,
    %c8_i32 = arith.constant 8 : i32
    %57 = arith.addi %0, %c8_i32 : i32
    %58 = arith.index_cast %57 : i32 to index
    %59 = memref.load %arg1[%58] : memref<16xi32, #tpu.memory_space<smem>>
    %60 = arith.index_cast %59 : i32 to index
    %c0_24 = arith.constant 0 : index
    %c0_25 = arith.constant 0 : index
    %61 = vector.load %arg2[%60, %c0_24, %c0_25] : memref<64x1x128xf32, #tpu.memory_space<vmem>>, vector<1x1x128xf32>
    %62 = vector.shape_cast %61 : vector<1x1x128xf32> to vector<1x128xf32>
    %c8 = arith.constant 8 : index
    %c0_26 = arith.constant 0 : index
    %63 = vector.load %arg3[%c8, %c0_26] : memref<16x128xf32, #tpu.memory_space<vmem>>, vector<1x128xf32>
    tpu.vector_store %arg3[%c8, %c0_26], %62 {strides = array<i32>} : memref<16x128xf32, #tpu.memory_space<vmem>>, vector<1x128xf32>,
    %c9_i32 = arith.constant 9 : i32
    %64 = arith.addi %0, %c9_i32 : i32
    %65 = arith.index_cast %64 : i32 to index
    %66 = memref.load %arg1[%65] : memref<16xi32, #tpu.memory_space<smem>>
    %67 = arith.index_cast %66 : i32 to index
    %c0_27 = arith.constant 0 : index
    %c0_28 = arith.constant 0 : index
    %68 = vector.load %arg2[%67, %c0_27, %c0_28] : memref<64x1x128xf32, #tpu.memory_space<vmem>>, vector<1x1x128xf32>
    %69 = vector.shape_cast %68 : vector<1x1x128xf32> to vector<1x128xf32>
    %c9 = arith.constant 9 : index
    %c0_29 = arith.constant 0 : index
    %70 = vector.load %arg3[%c9, %c0_29] : memref<16x128xf32, #tpu.memory_space<vmem>>, vector<1x128xf32>
    tpu.vector_store %arg3[%c9, %c0_29], %69 {strides = array<i32>} : memref<16x128xf32, #tpu.memory_space<vmem>>, vector<1x128xf32>,
    %c10_i32 = arith.constant 10 : i32
    %71 = arith.addi %0, %c10_i32 : i32
    %72 = arith.index_cast %71 : i32 to index
    %73 = memref.load %arg1[%72] : memref<16xi32, #tpu.memory_space<smem>>
    %74 = arith.index_cast %73 : i32 to index
    %c0_30 = arith.constant 0 : index
    %c0_31 = arith.constant 0 : index
    %75 = vector.load %arg2[%74, %c0_30, %c0_31] : memref<64x1x128xf32, #tpu.memory_space<vmem>>, vector<1x1x128xf32>
    %76 = vector.shape_cast %75 : vector<1x1x128xf32> to vector<1x128xf32>
    %c10 = arith.constant 10 : index
    %c0_32 = arith.constant 0 : index
    %77 = vector.load %arg3[%c10, %c0_32] : memref<16x128xf32, #tpu.memory_space<vmem>>, vector<1x128xf32>
    tpu.vector_store %arg3[%c10, %c0_32], %76 {strides = array<i32>} : memref<16x128xf32, #tpu.memory_space<vmem>>, vector<1x128xf32>,
    %c11_i32 = arith.constant 11 : i32
    %78 = arith.addi %0, %c11_i32 : i32
    %79 = arith.index_cast %78 : i32 to index
    %80 = memref.load %arg1[%79] : memref<16xi32, #tpu.memory_space<smem>>
    %81 = arith.index_cast %80 : i32 to index
    %c0_33 = arith.constant 0 : index
    %c0_34 = arith.constant 0 : index
    %82 = vector.load %arg2[%81, %c0_33, %c0_34] : memref<64x1x128xf32, #tpu.memory_space<vmem>>, vector<1x1x128xf32>
    %83 = vector.shape_cast %82 : vector<1x1x128xf32> to vector<1x128xf32>
    %c11 = arith.constant 11 : index
    %c0_35 = arith.constant 0 : index
    %84 = vector.load %arg3[%c11, %c0_35] : memref<16x128xf32, #tpu.memory_space<vmem>>, vector<1x128xf32>
    tpu.vector_store %arg3[%c11, %c0_35], %83 {strides = array<i32>} : memref<16x128xf32, #tpu.memory_space<vmem>>, vector<1x128xf32>,
    %c12_i32 = arith.constant 12 : i32
    %85 = arith.addi %0, %c12_i32 : i32
    %86 = arith.index_cast %85 : i32 to index
    %87 = memref.load %arg1[%86] : memref<16xi32, #tpu.memory_space<smem>>
    %88 = arith.index_cast %87 : i32 to index
    %c0_36 = arith.constant 0 : index
    %c0_37 = arith.constant 0 : index
    %89 = vector.load %arg2[%88, %c0_36, %c0_37] : memref<64x1x128xf32, #tpu.memory_space<vmem>>, vector<1x1x128xf32>
    %90 = vector.shape_cast %89 : vector<1x1x128xf32> to vector<1x128xf32>
    %c12 = arith.constant 12 : index
    %c0_38 = arith.constant 0 : index
    %91 = vector.load %arg3[%c12, %c0_38] : memref<16x128xf32, #tpu.memory_space<vmem>>, vector<1x128xf32>
    tpu.vector_store %arg3[%c12, %c0_38], %90 {strides = array<i32>} : memref<16x128xf32, #tpu.memory_space<vmem>>, vector<1x128xf32>,
    %c13_i32 = arith.constant 13 : i32
    %92 = arith.addi %0, %c13_i32 : i32
    %93 = arith.index_cast %92 : i32 to index
    %94 = memref.load %arg1[%93] : memref<16xi32, #tpu.memory_space<smem>>
    %95 = arith.index_cast %94 : i32 to index
    %c0_39 = arith.constant 0 : index
    %c0_40 = arith.constant 0 : index
    %96 = vector.load %arg2[%95, %c0_39, %c0_40] : memref<64x1x128xf32, #tpu.memory_space<vmem>>, vector<1x1x128xf32>
    %97 = vector.shape_cast %96 : vector<1x1x128xf32> to vector<1x128xf32>
    %c13 = arith.constant 13 : index
    %c0_41 = arith.constant 0 : index
    %98 = vector.load %arg3[%c13, %c0_41] : memref<16x128xf32, #tpu.memory_space<vmem>>, vector<1x128xf32>
    tpu.vector_store %arg3[%c13, %c0_41], %97 {strides = array<i32>} : memref<16x128xf32, #tpu.memory_space<vmem>>, vector<1x128xf32>,
    %c14_i32 = arith.constant 14 : i32
    %99 = arith.addi %0, %c14_i32 : i32
    %100 = arith.index_cast %99 : i32 to index
    %101 = memref.load %arg1[%100] : memref<16xi32, #tpu.memory_space<smem>>
    %102 = arith.index_cast %101 : i32 to index
    %c0_42 = arith.constant 0 : index
    %c0_43 = arith.constant 0 : index
    %103 = vector.load %arg2[%102, %c0_42, %c0_43] : memref<64x1x128xf32, #tpu.memory_space<vmem>>, vector<1x1x128xf32>
    %104 = vector.shape_cast %103 : vector<1x1x128xf32> to vector<1x128xf32>
    %c14 = arith.constant 14 : index
    %c0_44 = arith.constant 0 : index
    %105 = vector.load %arg3[%c14, %c0_44] : memref<16x128xf32, #tpu.memory_space<vmem>>, vector<1x128xf32>
    tpu.vector_store %arg3[%c14, %c0_44], %104 {strides = array<i32>} : memref<16x128xf32, #tpu.memory_space<vmem>>, vector<1x128xf32>,
    %c15_i32 = arith.constant 15 : i32
    %106 = arith.addi %0, %c15_i32 : i32
    %107 = arith.index_cast %106 : i32 to index
    %108 = memref.load %arg1[%107] : memref<16xi32, #tpu.memory_space<smem>>
    %109 = arith.index_cast %108 : i32 to index
    %c0_45 = arith.constant 0 : index
    %c0_46 = arith.constant 0 : index
    %110 = vector.load %arg2[%109, %c0_45, %c0_46] : memref<64x1x128xf32, #tpu.memory_space<vmem>>, vector<1x1x128xf32>
    %111 = vector.shape_cast %110 : vector<1x1x128xf32> to vector<1x128xf32>
    %c15 = arith.constant 15 : index
    %c0_47 = arith.constant 0 : index
    %112 = vector.load %arg3[%c15, %c0_47] : memref<16x128xf32, #tpu.memory_space<vmem>>, vector<1x128xf32>
    tpu.vector_store %arg3[%c15, %c0_47], %111 {strides = array<i32>} : memref<16x128xf32, #tpu.memory_space<vmem>>, vector<1x128xf32>,
    return
  }
  func.func @transform_0(%arg0: i32, %arg1: memref<16xi32, #tpu.memory_space<smem>>) -> (i32, i32, i32) {
    %c0_i32 = arith.constant 0 : i32
    %c0_i32_0 = arith.constant 0 : i32
    %c0_i32_1 = arith.constant 0 : i32
    %c0_i32_2 = arith.constant 0 : i32
    return %c0_i32, %c0_i32_0, %c0_i32_1 : i32, i32, i32
  }
  func.func @transform_1(%arg0: i32, %arg1: memref<16xi32, #tpu.memory_space<smem>>) -> (i32, i32) {
    %c0_i32 = arith.constant 0 : i32
    %c0_i32_0 = arith.constant 0 : i32
    return %arg0, %c0_i32 : i32, i32
  }
}

</mosaic_0001>

<bundles_post_ra>
// kernel: tpu_custom_call.1
= control target key start
LH: loop header
LB: loop body
LE: loop exit
PB: predicated region body
PF: predicated region fallthrough
CT: control target
= control target key end

     0   :  { %s217_s9 = smov [#allocation3]   ;;  %s248_s0 = inlined_call_operand.hbm [shape: s32[16], index: 0, kind: input, shape index: {}]   ;;  %s249_s1 = inlined_call_operand.hbm [shape: f32[64,1,128], index: 1, kind: input, shape index: {}]   ;;  %s250_s2 = inlined_call_operand.hbm [shape: f32[16,128], index: 2, kind: output, shape index: {}]  }
   0x1   :  { %8 = dma.hbm_to_smem %s248_s0, 16, %s217_s9, [#allocation2] }
   0x2   :  { %211 = dma.done.wait [#allocation2], 16 }
   0x3   :  { %212 = vsyncadd [#allocation2], 4294967280 }
   0x4   :  { %10 = sfence }
   0x5   :  { %11 = vsyncpa [#allocation5], 0 }
   0x6   :  { %12 = vsyncpa [#allocation6], 0  ;;  %s218_s12 = smov [#allocation4]  }
   0x7   :  { %s18_s13 = sshll.u32 %s218_s12, 4  ;;  %s19_s13 = int_to_ptr.vmem [resolvable:$true] %s18_s13 }
   0x8   :  { %s179_s14 = scalar_lea.vmem %s19_s13, 1024  ;;  %p184_p1 = scmp.lt.s32.totalorder %s19_s13, %s19_s13 }
   0x9   :  { %p180_p0 = scmp.ne.s32.totalorder %s19_s13, %s179_s14  ;;  %p185_p2 = scmp.lt.s32.totalorder %s179_s14, %s179_s14 }
   0xb   :  { %p186_p3 = por %p185_p2, %p184_p1 }
   0xd   :  { %p187_p4 = pnand %p186_p3, %p180_p0 }
   0xf   :  { %190 = shalt.err (!%p187_p4)
}
  0x10   :  { %s219_s15 = smov 16   ;;  %s220_s16 = smov 1  }
  0x11   :  { %24 = dma.hbm_to_vmem [thread:$0]  %s249_s1, 1024, %s19_s13, [#allocation5], %s219_s15, %s219_s15, %s220_s16  }
  0x12   :  { %213 = dma.done.wait [#allocation5], 1024  }
  0x13   :  { %214 = vsyncadd [#allocation5], 4294966272  ;;  %s29_s0 = sld [smem:[#allocation3]]  ;;  %s221_s16 = smov [#allocation7]  }
  0x14   :  { %s141_s19 = sld [smem:[#allocation3 + $0x1]]  ;;  %s113_s17 = sshll.u32 %s221_s16, 4  ;;  %s114_s17 = int_to_ptr.vmem [resolvable:$true] %s113_s17 }
  0x15   :  { %s142_s20 = sld [smem:[#allocation3 + $0x2]]  ;;  %p196_p6 = scmp.lt.s32.totalorder %s114_s17, %s114_s17 }
  0x16   :  { %s143_s21 = sld [smem:[#allocation3 + $0x3]] }
  0x17   :  { %s144_s22 = sld [smem:[#allocation3 + $0x4]] }
  0x18   :  { %s145_s23 = sld [smem:[#allocation3 + $0x5]] }
  0x19   :  { %s146_s24 = sld [smem:[#allocation3 + $0x6]]  ;;  %s30_s25 = scalar_lea.vmem [#allocation4], %s29_s0 }
  0x1a   :  { %v31_v0 = vld [vmem:[%s30_s25] sm:$0x1]  ;;  %s147_s26 = sld [smem:[#allocation3 + $0x7]]  ;;  %s35_s27 = scalar_lea.vmem [#allocation4], %s141_s19 }
  0x1b   :  { %32 = vst [vmem:[#allocation7] sm:$0x1] %v31_v0  ;;  %v36_v1 = vld [vmem:[%s35_s27] sm:$0x1]  ;;  %s148_s28 = sld [smem:[#allocation3 + $0x8]]  ;;  %s40_s29 = scalar_lea.vmem [#allocation4], %s142_s20 }
  0x1c   :  { %37 = vst [vmem:[#allocation7 + $0x1] sm:$0x1] %v36_v1  ;;  %v41_v2 = vld [vmem:[%s40_s29] sm:$0x1]  ;;  %s149_s1 = sld [smem:[#allocation3 + $0x9]]  ;;  %s45_s30 = scalar_lea.vmem [#allocation4], %s143_s21 }
  0x1d   :  { %42 = vst [vmem:[#allocation7 + $0x2] sm:$0x1] %v41_v2  ;;  %v46_v3 = vld [vmem:[%s45_s30] sm:$0x1]  ;;  %s150_s3 = sld [smem:[#allocation3 + $0xa]]  ;;  %s50_s4 = scalar_lea.vmem [#allocation4], %s144_s22 }
  0x1e   :  { %47 = vst [vmem:[#allocation7 + $0x3] sm:$0x1] %v46_v3  ;;  %v51_v4 = vld [vmem:[%s50_s4] sm:$0x1]  ;;  %s151_s5 = sld [smem:[#allocation3 + $0xb]]  ;;  %s55_s6 = scalar_lea.vmem [#allocation4], %s145_s23 }
  0x1f   :  { %52 = vst [vmem:[#allocation7 + $0x4] sm:$0x1] %v51_v4  ;;  %v56_v5 = vld [vmem:[%s55_s6] sm:$0x1]  ;;  %s152_s7 = sld [smem:[#allocation3 + $0xc]]  ;;  %s60_s8 = scalar_lea.vmem [#allocation4], %s146_s24 }
  0x20   :  { %57 = vst [vmem:[#allocation7 + $0x5] sm:$0x1] %v56_v5  ;;  %v61_v6 = vld [vmem:[%s60_s8] sm:$0x1]  ;;  %s153_s9 = sld [smem:[#allocation3 + $0xd]]  ;;  %s65_s10 = scalar_lea.vmem [#allocation4], %s147_s26 }
  0x21   :  { %62 = vst [vmem:[#allocation7 + $0x6] sm:$0x1] %v61_v6  ;;  %v66_v7 = vld [vmem:[%s65_s10] sm:$0x1]  ;;  %s154_s11 = sld [smem:[#allocation3 + $0xe]]  ;;  %s70_s12 = scalar_lea.vmem [#allocation4], %s148_s28 }
  0x22   :  { %67 = vst [vmem:[#allocation7 + $0x7] sm:$0x1] %v66_v7  ;;  %v71_v8 = vld [vmem:[%s70_s12] sm:$0x1]  ;;  %s155_s13 = sld [smem:[#allocation3 + $0xf]]  ;;  %s75_s14 = scalar_lea.vmem [#allocation4], %s149_s1 }
  0x23   :  { %72 = vst [vmem:[#allocation7 + $0x8] sm:$0x1] %v71_v8  ;;  %v76_v9 = vld [vmem:[%s75_s14] sm:$0x1]  ;;  %s80_s15 = scalar_lea.vmem [#allocation4], %s150_s3  ;;  %s191_s22 = scalar_lea.vmem %s114_s17, 256 }
  0x24   :  { %77 = vst [vmem:[#allocation7 + $0x9] sm:$0x1] %v76_v9  ;;  %v81_v10 = vld [vmem:[%s80_s15] sm:$0x1]  ;;  %s85_s18 = scalar_lea.vmem [#allocation4], %s151_s5  ;;  %p192_p5 = scmp.ne.s32.totalorder %s114_s17, %s191_s22 }
  0x25   :  { %82 = vst [vmem:[#allocation7 + $0xa] sm:$0x1] %v81_v10  ;;  %v86_v11 = vld [vmem:[%s85_s18] sm:$0x1]  ;;  %s90_s0 = scalar_lea.vmem [#allocation4], %s152_s7  ;;  %p197_p7 = scmp.lt.s32.totalorder %s191_s22, %s191_s22 }
  0x26   :  { %87 = vst [vmem:[#allocation7 + $0xb] sm:$0x1] %v86_v11  ;;  %v91_v12 = vld [vmem:[%s90_s0] sm:$0x1]  ;;  %s95_s19 = scalar_lea.vmem [#allocation4], %s153_s9 }
  0x27   :  { %92 = vst [vmem:[#allocation7 + $0xc] sm:$0x1] %v91_v12  ;;  %v96_v13 = vld [vmem:[%s95_s19] sm:$0x1]  ;;  %s100_s20 = scalar_lea.vmem [#allocation4], %s154_s11  ;;  %p198_p8 = por %p197_p7, %p196_p6 }
  0x28   :  { %97 = vst [vmem:[#allocation7 + $0xd] sm:$0x1] %v96_v13  ;;  %v101_v14 = vld [vmem:[%s100_s20] sm:$0x1]  ;;  %s105_s21 = scalar_lea.vmem [#allocation4], %s155_s13 }
  0x29   :  { %102 = vst [vmem:[#allocation7 + $0xe] sm:$0x1] %v101_v14  ;;  %v106_v15 = vld [vmem:[%s105_s21] sm:$0x1]  ;;  %p199_p9 = pnand %p198_p8, %p192_p5 }
  0x2a   :  { %107 = vst [vmem:[#allocation7 + $0xf] sm:$0x1] %v106_v15 }
  0x2b   :  { %202 = shalt.err (!%p199_p9)
}
  0x2c   :  { %s222_s23 = smov 128   ;;  %s223_s24 = smov 8  }
  0x2d   :  { %119 = dma.vmem_to_hbm [thread:$0]  %s114_s17, 256, %s250_s2, [#allocation6], %s222_s23, %s222_s23, %s223_s24  }
  0x2e   :  { %215 = dma.done.wait [#allocation6], 256  }
  0x2f   :  { %216 = vsyncadd [#allocation6], 4294967040 }
  0x30   :  { %123 = vsyncpa [#allocation5], 1 }
  0x31   :  { %124 = vsyncpa [#allocation6], 1 }

</bundles_post_ra>
